<compile_context>
chip_gen: v7x
topology: tpu7x:2x2x1
jax: 0.10.0
libtpu: 0.0.40
codegen_flags: <defaults>
</compile_context>

<pallas_src>
import math
import functools

import jax
import jax.numpy as jnp
from jax import lax
from jax.experimental import pallas as pl
from jax.experimental.pallas import tpu as pltpu


def _pick_q_tile(seq_len):
    """Largest convenient query tile that divides S (S itself for small S)."""
    for t in (512, 256, 128):
        if seq_len % t == 0 and seq_len > t:
            return t
    return seq_len


def _pick_head_group(num_heads, head_size):
    """Smallest #heads per group whose combined width is a multiple of 128."""
    for g in range(1, num_heads + 1):
        if num_heads % g == 0 and (g * head_size) % 128 == 0:
            return g
    return num_heads  # fallback: one group spanning all heads (tiny configs)


def _vmem_limit_bytes():
    cap = 64 * 1024 * 1024  # conservative default = v7x physical VMEM per TC
    try:
        cap = int(getattr(pltpu.get_tpu_info(), "vmem_capacity_bytes", cap))
    except Exception:
        pass
    # Leave headroom for compiler-internal scratch / semaphores:
    # ~48 MiB on v7x, ~96-100 MiB on v5e/v6e.
    return min(100 * 1024 * 1024, (cap * 3) // 4)


def _attn_kernel(x_ref, w_ref, b_ref, mask_ref, o_ref,
                 q_scr, k_scr, v_scr, ctx_scr, *,
                 hidden, head_size, group, n_groups, q_tile, n_q_tiles):
    # x_ref:    (S, H)    bf16 (leading batch dim squeezed)
    # w_ref:    (H, 3H)   bf16 fused [Wq/sqrt(d) | Wk | Wv]
    # b_ref:    (1, 3H)   f32  fused [bq/sqrt(d) | bk | bv]
    # mask_ref: (1, S)    f32  additive key mask (broadcasts over queries)
    # o_ref:    (tq, H)   output tile
    # q_scr:    (n_q_tiles*n_groups, tq, gw) bf16 (pre-scaled Q, head-grouped)
    # k_scr:    (n_groups, S, gw)  bf16
    # v_scr:    (n_groups, S, gw)  bf16
    # ctx_scr:  (n_groups, tq, gw) f32
    gw = group * head_size
    qi = pl.program_id(1)

    # ---- fused lane-dense QKV projection: once per batch element ----
    @pl.when(qi == 0)
    def _():
        x = x_ref[...]                                                # (S, H) bf16
        qkv = jnp.dot(x, w_ref[...], preferred_element_type=jnp.float32)
        qkv = (qkv + b_ref[...]).astype(jnp.bfloat16)                 # (S, 3H)
        # Static split into head-grouped slabs (static, 128-aligned lane slices
        # when gw % 128 == 0).  All later dynamic indexing is leading-dim only.
        for grp in range(n_groups):
            c = grp * gw
            k_scr[grp] = qkv[:, hidden + c: hidden + c + gw]
            v_scr[grp] = qkv[:, 2 * hidden + c: 2 * hidden + c + gw]
            for t in range(n_q_tiles):
                q_scr[t * n_groups + grp] = qkv[t * q_tile:(t + 1) * q_tile, c:c + gw]

    mask = mask_ref[...]                                              # (1, S) f32

    # ---- attention for this query tile, one 128-lane head group at a time ----
    @pl.loop(0, n_groups)
    def _(grp):
        qg = q_scr[qi * n_groups + grp]                               # (tq, gw) bf16
        kg = k_scr[grp]                                               # (S, gw)  bf16
        vg = v_scr[grp]                                               # (S, gw)  bf16
        parts = []
        for i in range(group):                                        # tiny static loop
            lo = i * head_size
            qh = qg[:, lo:lo + head_size]                             # (tq, dh)
            kh = kg[:, lo:lo + head_size]                             # (S, dh)
            vh = vg[:, lo:lo + head_size]                             # (S, dh)
            # Q @ K^T with the transpose folded into the contraction (no XLU
            # transpose); bf16 operands, f32 accumulation on the MXU.
            s = lax.dot_general(qh, kh, (((1,), (1,)), ((), ())),
                                preferred_element_type=jnp.float32)   # (tq, S)
            s = s + mask                                              # key-mask broadcast
            m = jnp.max(s, axis=-1, keepdims=True)
            e = jnp.exp(s - m)
            denom = jnp.sum(e, axis=-1, keepdims=True)
            # TODO(synk): eval-mode dropout on attention probs == identity.
            ctx = jnp.dot(e.astype(jnp.bfloat16), vh,
                          preferred_element_type=jnp.float32)         # (tq, dh)
            # Deferred normalization: scale the (tq,dh) context, not (tq,S) probs.
            parts.append(ctx * pl.reciprocal(denom, approx=True))
        ctx_scr[grp] = parts[0] if group == 1 else jnp.concatenate(parts, axis=-1)

    # Single lane-dense (tq, H) store of the assembled context tile.
    out = (ctx_scr[0] if n_groups == 1
           else jnp.concatenate([ctx_scr[i] for i in range(n_groups)], axis=-1))
    o_ref[...] = out.astype(o_ref.dtype)


def self_attention_pallas(x, attention_mask, params, *, num_heads):
    """x: (B, S, H) float32; attention_mask: (B, 1, 1, S) additive float32."""
    B, S, H = x.shape
    assert H % num_heads == 0
    dh = H // num_heads

    group = _pick_head_group(num_heads, dh)
    n_groups = num_heads // group
    gw = group * dh
    tq = _pick_q_tile(S)
    n_q_tiles = S // tq

    inv_sqrt_d = 1.0 / math.sqrt(dh)

    # Fused QKV weight, lane-dense (H, 3H) bf16; softmax scale folded into Wq/bq.
    w_qkv = jnp.concatenate(
        [params["wq"] * inv_sqrt_d, params["wk"], params["wv"]], axis=1
    ).astype(jnp.bfloat16)                                            # (H, 3H)
    b_qkv = jnp.concatenate(
        [params["bq"] * inv_sqrt_d, params["bk"], params["bv"]]
    ).reshape(1, 3 * H).astype(jnp.float32)                           # (1, 3H)

    x_bf16 = x.astype(jnp.bfloat16)
    # Key-only additive mask, (B, 1, S); broadcast over queries inside the kernel.
    mask_b1s = attention_mask.reshape(B, 1, S).astype(jnp.float32)

    kernel = functools.partial(
        _attn_kernel, hidden=H, head_size=dh, group=group,
        n_groups=n_groups, q_tile=tq, n_q_tiles=n_q_tiles)

    const_buf = pl.Buffered(1)  # grid-invariant inputs: single-buffer

    out = pl.pallas_call(
        kernel,
        out_shape=jax.ShapeDtypeStruct((B, S, H), x.dtype),
        grid_spec=pltpu.PrefetchScalarGridSpec(
            num_scalar_prefetch=0,
            grid=(B, n_q_tiles),
            in_specs=[
                pl.BlockSpec((pl.Squeezed(), S, H), lambda b, q: (b, 0, 0)),   # x
                pl.BlockSpec((H, 3 * H), lambda b, q: (0, 0),
                             pipeline_mode=const_buf),                         # w_qkv
                pl.BlockSpec((1, 3 * H), lambda b, q: (0, 0),
                             pipeline_mode=const_buf),                         # b_qkv
                pl.BlockSpec((pl.Squeezed(), 1, S), lambda b, q: (b, 0, 0)),   # mask
            ],
            out_specs=pl.BlockSpec((pl.Squeezed(), tq, H), lambda b, q: (b, q, 0)),
            scratch_shapes=[
                pltpu.VMEM((n_q_tiles * n_groups, tq, gw), jnp.bfloat16),  # Q (scaled)
                pltpu.VMEM((n_groups, S, gw), jnp.bfloat16),               # K
                pltpu.VMEM((n_groups, S, gw), jnp.bfloat16),               # V
                pltpu.VMEM((n_groups, tq, gw), jnp.float32),               # ctx per group
            ],
        ),
        compiler_params=pltpu.CompilerParams(
            dimension_semantics=("parallel", "arbitrary"),
            vmem_limit_bytes=_vmem_limit_bytes(),
        ),
    )(x_bf16, w_qkv, b_qkv, mask_b1s)
    return out


def self_attention_reference(x, attention_mask, params, *, num_heads):
    """Pure-JAX f32 reference mirroring the PyTorch forward (eval mode).

    Note: the torch module returns context_layer before its layernorm lines
    (dead code), so no residual/LayerNorm is applied here either."""
    B, S, H = x.shape
    dh = H // num_heads
    q = x @ params["wq"] + params["bq"]
    k = x @ params["wk"] + params["bk"]
    v = x @ params["wv"] + params["bv"]

    def split(t):  # (B,S,H) -> (B,nH,S,dh)
        return t.reshape(B, S, num_heads, dh).transpose(0, 2, 1, 3)

    q, k, v = split(q), split(k), split(v)
    scores = jnp.einsum("bhqd,bhkd->bhqk", q, k) / math.sqrt(dh)
    scores = scores + attention_mask               # (B,1,1,S) broadcasts
    probs = jax.nn.softmax(scores, axis=-1)
    ctx = jnp.einsum("bhqk,bhkd->bhqd", probs, v)
    ctx = ctx.transpose(0, 2, 1, 3).reshape(B, S, H)
    return ctx


if __name__ == "__main__":
    B, S, H, NH = 2, 8, 32, 4

    key = jax.random.PRNGKey(0)
    kx, kq, kk, kv, kbq, kbk, kbv, kmask = jax.random.split(key, 8)

    x = jax.random.normal(kx, (B, S, H), dtype=jnp.float32)

    # Weights stored as (in, out) so projection = x @ W + b (equivalent to
    # torch.nn.Linear's x @ W.T + b with W of shape (out, in)).
    scale = 1.0 / math.sqrt(H)
    params = {
        "wq": jax.random.uniform(kq, (H, H), jnp.float32, -scale, scale),
        "wk": jax.random.uniform(kk, (H, H), jnp.float32, -scale, scale),
        "wv": jax.random.uniform(kv, (H, H), jnp.float32, -scale, scale),
        "bq": jax.random.uniform(kbq, (H,), jnp.float32, -scale, scale),
        "bk": jax.random.uniform(kbk, (H,), jnp.float32, -scale, scale),
        "bv": jax.random.uniform(kbv, (H,), jnp.float32, -scale, scale),
    }

    # BERT-style additive mask: 0 for keep, -10000 for masked positions.
    keep = (jax.random.uniform(kmask, (B, S)) > 0.2).astype(jnp.float32)
    attention_mask = ((1.0 - keep) * -10000.0).reshape(B, 1, 1, S)

    out = self_attention_pallas(x, attention_mask, params, num_heads=NH)
    out = jax.block_until_ready(out)

    ref = self_attention_reference(x, attention_mask, params, num_heads=NH)
    assert out.shape == (B, S, H)
    # bf16 MXU operands + approx reciprocal => bf16-aware tolerance (f32 accumulation).
    assert jnp.allclose(out, ref, atol=3e-2, rtol=3e-2), "mismatch vs reference"

    print("KERNEL_OK")
</pallas_src>

<mosaic_0001>
module attributes {stable_mosaic.version = 11 : i64} {
  func.func @_attn_kernel(%arg0: i32, %arg1: i32, %arg2: memref<1x8x32xbf16, #tpu.memory_space<vmem>>, %arg3: memref<32x96xbf16, #tpu.memory_space<vmem>>, %arg4: memref<1x96xf32, #tpu.memory_space<vmem>>, %arg5: memref<1x1x8xf32, #tpu.memory_space<vmem>>, %arg6: memref<1x8x32xf32, #tpu.memory_space<vmem>>, %arg7: memref<1x8x32xbf16, #tpu.memory_space<vmem>>, %arg8: memref<1x8x32xbf16, #tpu.memory_space<vmem>>, %arg9: memref<1x8x32xbf16, #tpu.memory_space<vmem>>, %arg10: memref<1x8x32xf32, #tpu.memory_space<vmem>>) attributes {dimension_semantics = [#tpu.dimension_semantics<parallel>, #tpu.dimension_semantics<arbitrary>], iteration_bounds = array<i64: 2, 1>, scalar_prefetch = 0 : i64, scratch_operands = 4 : i64, tpu.core_type = #tpu.core_type<tc>, window_params = [{transform_indices = @transform_0, window_bounds = array<i64: 1, 8, 32>}, {pipeline_mode = #tpu.pipeline_mode<synchronous>, transform_indices = @transform_1, window_bounds = array<i64: 32, 96>}, {pipeline_mode = #tpu.pipeline_mode<synchronous>, transform_indices = @transform_2, window_bounds = array<i64: 1, 96>}, {transform_indices = @transform_3, window_bounds = array<i64: 1, 1, 8>}, {transform_indices = @transform_4, window_bounds = array<i64: 1, 8, 32>}]} {
    %c0_i32 = arith.constant 0 : i32
    %0 = arith.cmpi eq, %arg1, %c0_i32 : i32
    %1 = arith.extui %0 : i1 to i32
    %c0_i32_0 = arith.constant 0 : i32
    %2 = arith.cmpi ne, %1, %c0_i32_0 : i32
    scf.if %2 {
      %c0_36 = arith.constant 0 : index
      %c0_37 = arith.constant 0 : index
      %c0_38 = arith.constant 0 : index
      %100 = vector.load %arg2[%c0_36, %c0_37, %c0_38] : memref<1x8x32xbf16, #tpu.memory_space<vmem>>, vector<1x8x32xbf16>
      %101 = vector.shape_cast %100 : vector<1x8x32xbf16> to vector<8x32xbf16>
      %c0_39 = arith.constant 0 : index
      %c0_40 = arith.constant 0 : index
      %102 = vector.load %arg3[%c0_39, %c0_40] : memref<32x96xbf16, #tpu.memory_space<vmem>>, vector<32x96xbf16>
      %cst_41 = arith.constant dense<0.000000e+00> : vector<8x96xf32>
      %103 = tpu.matmul %101, %102, %cst_41 {dimension_numbers = #tpu.dot_dimension_numbers<[1], [0], [0], [1], [0, 0, 1, 1], [], []>} : vector<8x32xbf16>, vector<32x96xbf16>, vector<8x96xf32> -> vector<8x96xf32>
      %c0_42 = arith.constant 0 : index
      %c0_43 = arith.constant 0 : index
      %104 = vector.load %arg4[%c0_42, %c0_43] : memref<1x96xf32, #tpu.memory_space<vmem>>, vector<1x96xf32>
      %105 = vector.broadcast %104 : vector<1x96xf32> to vector<8x96xf32>
      %106 = arith.addf %103, %105 : vector<8x96xf32>
      %107 = arith.truncf %106 : vector<8x96xf32> to vector<8x96xbf16>
      %108 = vector.extract_strided_slice %107 {offsets = [0, 32], sizes = [8, 32], strides = [1, 1]} : vector<8x96xbf16> to vector<8x32xbf16>
      %c0_44 = arith.constant 0 : index
      %c0_45 = arith.constant 0 : index
      %c0_46 = arith.constant 0 : index
      %109 = vector.load %arg8[%c0_44, %c0_45, %c0_46] : memref<1x8x32xbf16, #tpu.memory_space<vmem>>, vector<1x8x32xbf16>
      %110 = vector.shape_cast %109 : vector<1x8x32xbf16> to vector<8x32xbf16>
      %111 = vector.shape_cast %108 : vector<8x32xbf16> to vector<1x8x32xbf16>
      tpu.vector_store %arg8[%c0_44, %c0_45, %c0_46], %111 {strides = array<i32>} : memref<1x8x32xbf16, #tpu.memory_space<vmem>>, vector<1x8x32xbf16>,
      %112 = vector.extract_strided_slice %107 {offsets = [0, 64], sizes = [8, 32], strides = [1, 1]} : vector<8x96xbf16> to vector<8x32xbf16>
      %c0_47 = arith.constant 0 : index
      %c0_48 = arith.constant 0 : index
      %c0_49 = arith.constant 0 : index
      %113 = vector.load %arg9[%c0_47, %c0_48, %c0_49] : memref<1x8x32xbf16, #tpu.memory_space<vmem>>, vector<1x8x32xbf16>
      %114 = vector.shape_cast %113 : vector<1x8x32xbf16> to vector<8x32xbf16>
      %115 = vector.shape_cast %112 : vector<8x32xbf16> to vector<1x8x32xbf16>
      tpu.vector_store %arg9[%c0_47, %c0_48, %c0_49], %115 {strides = array<i32>} : memref<1x8x32xbf16, #tpu.memory_space<vmem>>, vector<1x8x32xbf16>,
      %116 = vector.extract_strided_slice %107 {offsets = [0, 0], sizes = [8, 32], strides = [1, 1]} : vector<8x96xbf16> to vector<8x32xbf16>
      %c0_50 = arith.constant 0 : index
      %c0_51 = arith.constant 0 : index
      %c0_52 = arith.constant 0 : index
      %117 = vector.load %arg7[%c0_50, %c0_51, %c0_52] : memref<1x8x32xbf16, #tpu.memory_space<vmem>>, vector<1x8x32xbf16>
      %118 = vector.shape_cast %117 : vector<1x8x32xbf16> to vector<8x32xbf16>
      %119 = vector.shape_cast %116 : vector<8x32xbf16> to vector<1x8x32xbf16>
      tpu.vector_store %arg7[%c0_50, %c0_51, %c0_52], %119 {strides = array<i32>} : memref<1x8x32xbf16, #tpu.memory_space<vmem>>, vector<1x8x32xbf16>,
    } else {
    }
    %c0 = arith.constant 0 : index
    %c0_1 = arith.constant 0 : index
    %c0_2 = arith.constant 0 : index
    %3 = vector.load %arg5[%c0, %c0_1, %c0_2] : memref<1x1x8xf32, #tpu.memory_space<vmem>>, vector<1x1x8xf32>
    %4 = vector.shape_cast %3 : vector<1x1x8xf32> to vector<1x8xf32>
    %c0_i32_3 = arith.constant 0 : i32
    %c1_i32 = arith.constant 1 : i32
    %5 = arith.muli %c0_i32_3, %c1_i32 : i32
    %c0_i32_4 = arith.constant 0 : i32
    %6 = arith.addi %c0_i32_4, %5 : i32
    %c1_i32_5 = arith.constant 1 : i32
    %7 = arith.muli %arg1, %c1_i32_5 : i32
    %8 = arith.addi %7, %6 : i32
    %9 = arith.index_cast %8 : i32 to index
    %c0_6 = arith.constant 0 : index
    %c0_7 = arith.constant 0 : index
    %10 = vector.load %arg7[%9, %c0_6, %c0_7] : memref<1x8x32xbf16, #tpu.memory_space<vmem>>, vector<1x8x32xbf16>
    %11 = vector.shape_cast %10 : vector<1x8x32xbf16> to vector<8x32xbf16>
    %12 = arith.index_cast %6 : i32 to index
    %c0_8 = arith.constant 0 : index
    %c0_9 = arith.constant 0 : index
    %13 = vector.load %arg8[%12, %c0_8, %c0_9] : memref<1x8x32xbf16, #tpu.memory_space<vmem>>, vector<1x8x32xbf16>
    %14 = vector.shape_cast %13 : vector<1x8x32xbf16> to vector<8x32xbf16>
    %15 = arith.index_cast %6 : i32 to index
    %c0_10 = arith.constant 0 : index
    %c0_11 = arith.constant 0 : index
    %16 = vector.load %arg9[%15, %c0_10, %c0_11] : memref<1x8x32xbf16, #tpu.memory_space<vmem>>, vector<1x8x32xbf16>
    %17 = vector.shape_cast %16 : vector<1x8x32xbf16> to vector<8x32xbf16>
    %18 = vector.extract_strided_slice %11 {offsets = [0, 0], sizes = [8, 8], strides = [1, 1]} : vector<8x32xbf16> to vector<8x8xbf16>
    %19 = vector.extract_strided_slice %14 {offsets = [0, 0], sizes = [8, 8], strides = [1, 1]} : vector<8x32xbf16> to vector<8x8xbf16>
    %20 = vector.extract_strided_slice %17 {offsets = [0, 0], sizes = [8, 8], strides = [1, 1]} : vector<8x32xbf16> to vector<8x8xbf16>
    %cst = arith.constant dense<0.000000e+00> : vector<8x8xf32>
    %21 = tpu.matmul %18, %19, %cst {dimension_numbers = #tpu.dot_dimension_numbers<[1], [1], [0], [0], [0, 0, 1, 0], [], []>} : vector<8x8xbf16>, vector<8x8xbf16>, vector<8x8xf32> -> vector<8x8xf32>
    %22 = vector.broadcast %4 : vector<1x8xf32> to vector<8x8xf32>
    %23 = arith.addf %21, %22 : vector<8x8xf32>
    %cst_12 = arith.constant dense<0xFF800000> : vector<8xf32>
    %24 = vector.multi_reduction <maximumf>, %23, %cst_12 [1] : vector<8x8xf32> to vector<8xf32>
    %25 = vector.shape_cast %24 : vector<8xf32> to vector<8x1xf32>
    %26 = vector.broadcast %25 : vector<8x1xf32> to vector<8x8xf32>
    %27 = arith.subf %23, %26 : vector<8x8xf32>
    %28 = math.exp %27 : vector<8x8xf32>
    %cst_13 = arith.constant dense<0.000000e+00> : vector<8xf32>
    %29 = vector.multi_reduction <add>, %28, %cst_13 [1] : vector<8x8xf32> to vector<8xf32>
    %30 = vector.shape_cast %29 : vector<8xf32> to vector<8x1xf32>
    %31 = arith.truncf %28 : vector<8x8xf32> to vector<8x8xbf16>
    %cst_14 = arith.constant dense<0.000000e+00> : vector<8x8xf32>
    %32 = tpu.matmul %31, %20, %cst_14 {dimension_numbers = #tpu.dot_dimension_numbers<[1], [0], [0], [1], [0, 0, 1, 1], [], []>} : vector<8x8xbf16>, vector<8x8xbf16>, vector<8x8xf32> -> vector<8x8xf32>
    %33 = tpu.reciprocal %30 {approx = true} : vector<8x1xf32> -> vector<8x1xf32>
    %34 = vector.broadcast %33 : vector<8x1xf32> to vector<8x8xf32>
    %35 = arith.mulf %32, %34 : vector<8x8xf32>
    %36 = vector.extract_strided_slice %11 {offsets = [0, 8], sizes = [8, 8], strides = [1, 1]} : vector<8x32xbf16> to vector<8x8xbf16>
    %37 = vector.extract_strided_slice %14 {offsets = [0, 8], sizes = [8, 8], strides = [1, 1]} : vector<8x32xbf16> to vector<8x8xbf16>
    %38 = vector.extract_strided_slice %17 {offsets = [0, 8], sizes = [8, 8], strides = [1, 1]} : vector<8x32xbf16> to vector<8x8xbf16>
    %cst_15 = arith.constant dense<0.000000e+00> : vector<8x8xf32>
    %39 = tpu.matmul %36, %37, %cst_15 {dimension_numbers = #tpu.dot_dimension_numbers<[1], [1], [0], [0], [0, 0, 1, 0], [], []>} : vector<8x8xbf16>, vector<8x8xbf16>, vector<8x8xf32> -> vector<8x8xf32>
    %40 = vector.broadcast %4 : vector<1x8xf32> to vector<8x8xf32>
    %41 = arith.addf %39, %40 : vector<8x8xf32>
    %cst_16 = arith.constant dense<0xFF800000> : vector<8xf32>
    %42 = vector.multi_reduction <maximumf>, %41, %cst_16 [1] : vector<8x8xf32> to vector<8xf32>
    %43 = vector.shape_cast %42 : vector<8xf32> to vector<8x1xf32>
    %44 = vector.broadcast %43 : vector<8x1xf32> to vector<8x8xf32>
    %45 = arith.subf %41, %44 : vector<8x8xf32>
    %46 = math.exp %45 : vector<8x8xf32>
    %cst_17 = arith.constant dense<0.000000e+00> : vector<8xf32>
    %47 = vector.multi_reduction <add>, %46, %cst_17 [1] : vector<8x8xf32> to vector<8xf32>
    %48 = vector.shape_cast %47 : vector<8xf32> to vector<8x1xf32>
    %49 = arith.truncf %46 : vector<8x8xf32> to vector<8x8xbf16>
    %cst_18 = arith.constant dense<0.000000e+00> : vector<8x8xf32>
    %50 = tpu.matmul %49, %38, %cst_18 {dimension_numbers = #tpu.dot_dimension_numbers<[1], [0], [0], [1], [0, 0, 1, 1], [], []>} : vector<8x8xbf16>, vector<8x8xbf16>, vector<8x8xf32> -> vector<8x8xf32>
    %51 = tpu.reciprocal %48 {approx = true} : vector<8x1xf32> -> vector<8x1xf32>
    %52 = vector.broadcast %51 : vector<8x1xf32> to vector<8x8xf32>
    %53 = arith.mulf %50, %52 : vector<8x8xf32>
    %54 = vector.extract_strided_slice %11 {offsets = [0, 16], sizes = [8, 8], strides = [1, 1]} : vector<8x32xbf16> to vector<8x8xbf16>
    %55 = vector.extract_strided_slice %14 {offsets = [0, 16], sizes = [8, 8], strides = [1, 1]} : vector<8x32xbf16> to vector<8x8xbf16>
    %56 = vector.extract_strided_slice %17 {offsets = [0, 16], sizes = [8, 8], strides = [1, 1]} : vector<8x32xbf16> to vector<8x8xbf16>
    %cst_19 = arith.constant dense<0.000000e+00> : vector<8x8xf32>
    %57 = tpu.matmul %54, %55, %cst_19 {dimension_numbers = #tpu.dot_dimension_numbers<[1], [1], [0], [0], [0, 0, 1, 0], [], []>} : vector<8x8xbf16>, vector<8x8xbf16>, vector<8x8xf32> -> vector<8x8xf32>
    %58 = vector.broadcast %4 : vector<1x8xf32> to vector<8x8xf32>
    %59 = arith.addf %57, %58 : vector<8x8xf32>
    %cst_20 = arith.constant dense<0xFF800000> : vector<8xf32>
    %60 = vector.multi_reduction <maximumf>, %59, %cst_20 [1] : vector<8x8xf32> to vector<8xf32>
    %61 = vector.shape_cast %60 : vector<8xf32> to vector<8x1xf32>
    %62 = vector.broadcast %61 : vector<8x1xf32> to vector<8x8xf32>
    %63 = arith.subf %59, %62 : vector<8x8xf32>
    %64 = math.exp %63 : vector<8x8xf32>
    %cst_21 = arith.constant dense<0.000000e+00> : vector<8xf32>
    %65 = vector.multi_reduction <add>, %64, %cst_21 [1] : vector<8x8xf32> to vector<8xf32>
    %66 = vector.shape_cast %65 : vector<8xf32> to vector<8x1xf32>
    %67 = arith.truncf %64 : vector<8x8xf32> to vector<8x8xbf16>
    %cst_22 = arith.constant dense<0.000000e+00> : vector<8x8xf32>
    %68 = tpu.matmul %67, %56, %cst_22 {dimension_numbers = #tpu.dot_dimension_numbers<[1], [0], [0], [1], [0, 0, 1, 1], [], []>} : vector<8x8xbf16>, vector<8x8xbf16>, vector<8x8xf32> -> vector<8x8xf32>
    %69 = tpu.reciprocal %66 {approx = true} : vector<8x1xf32> -> vector<8x1xf32>
    %70 = vector.broadcast %69 : vector<8x1xf32> to vector<8x8xf32>
    %71 = arith.mulf %68, %70 : vector<8x8xf32>
    %72 = vector.extract_strided_slice %11 {offsets = [0, 24], sizes = [8, 8], strides = [1, 1]} : vector<8x32xbf16> to vector<8x8xbf16>
    %73 = vector.extract_strided_slice %14 {offsets = [0, 24], sizes = [8, 8], strides = [1, 1]} : vector<8x32xbf16> to vector<8x8xbf16>
    %74 = vector.extract_strided_slice %17 {offsets = [0, 24], sizes = [8, 8], strides = [1, 1]} : vector<8x32xbf16> to vector<8x8xbf16>
    %cst_23 = arith.constant dense<0.000000e+00> : vector<8x8xf32>
    %75 = tpu.matmul %72, %73, %cst_23 {dimension_numbers = #tpu.dot_dimension_numbers<[1], [1], [0], [0], [0, 0, 1, 0], [], []>} : vector<8x8xbf16>, vector<8x8xbf16>, vector<8x8xf32> -> vector<8x8xf32>
    %76 = vector.broadcast %4 : vector<1x8xf32> to vector<8x8xf32>
    %77 = arith.addf %75, %76 : vector<8x8xf32>
    %cst_24 = arith.constant dense<0xFF800000> : vector<8xf32>
    %78 = vector.multi_reduction <maximumf>, %77, %cst_24 [1] : vector<8x8xf32> to vector<8xf32>
    %79 = vector.shape_cast %78 : vector<8xf32> to vector<8x1xf32>
    %80 = vector.broadcast %79 : vector<8x1xf32> to vector<8x8xf32>
    %81 = arith.subf %77, %80 : vector<8x8xf32>
    %82 = math.exp %81 : vector<8x8xf32>
    %cst_25 = arith.constant dense<0.000000e+00> : vector<8xf32>
    %83 = vector.multi_reduction <add>, %82, %cst_25 [1] : vector<8x8xf32> to vector<8xf32>
    %84 = vector.shape_cast %83 : vector<8xf32> to vector<8x1xf32>
    %85 = arith.truncf %82 : vector<8x8xf32> to vector<8x8xbf16>
    %cst_26 = arith.constant dense<0.000000e+00> : vector<8x8xf32>
    %86 = tpu.matmul %85, %74, %cst_26 {dimension_numbers = #tpu.dot_dimension_numbers<[1], [0], [0], [1], [0, 0, 1, 1], [], []>} : vector<8x8xbf16>, vector<8x8xbf16>, vector<8x8xf32> -> vector<8x8xf32>
    %87 = tpu.reciprocal %84 {approx = true} : vector<8x1xf32> -> vector<8x1xf32>
    %88 = vector.broadcast %87 : vector<8x1xf32> to vector<8x8xf32>
    %89 = arith.mulf %86, %88 : vector<8x8xf32>
    %90 = tpu.concatenate %35, %53, %71, %89 in 1 : vector<8x8xf32>, vector<8x8xf32>, vector<8x8xf32>, vector<8x8xf32> -> vector<8x32xf32>
    %91 = arith.index_cast %6 : i32 to index
    %c0_27 = arith.constant 0 : index
    %c0_28 = arith.constant 0 : index
    %92 = vector.load %arg10[%91, %c0_27, %c0_28] : memref<1x8x32xf32, #tpu.memory_space<vmem>>, vector<1x8x32xf32>
    %93 = vector.shape_cast %92 : vector<1x8x32xf32> to vector<8x32xf32>
    %94 = vector.shape_cast %90 : vector<8x32xf32> to vector<1x8x32xf32>
    tpu.vector_store %arg10[%91, %c0_27, %c0_28], %94 {strides = array<i32>} : memref<1x8x32xf32, #tpu.memory_space<vmem>>, vector<1x8x32xf32>,
    %c1_i32_29 = arith.constant 1 : i32
    %c0_30 = arith.constant 0 : index
    %c0_31 = arith.constant 0 : index
    %c0_32 = arith.constant 0 : index
    %95 = vector.load %arg10[%c0_30, %c0_31, %c0_32] : memref<1x8x32xf32, #tpu.memory_space<vmem>>, vector<1x8x32xf32>
    %96 = vector.shape_cast %95 : vector<1x8x32xf32> to vector<8x32xf32>
    %c0_33 = arith.constant 0 : index
    %c0_34 = arith.constant 0 : index
    %c0_35 = arith.constant 0 : index
    %97 = vector.load %arg6[%c0_33, %c0_34, %c0_35] : memref<1x8x32xf32, #tpu.memory_space<vmem>>, vector<1x8x32xf32>
    %98 = vector.shape_cast %97 : vector<1x8x32xf32> to vector<8x32xf32>
    %99 = vector.shape_cast %96 : vector<8x32xf32> to vector<1x8x32xf32>
    tpu.vector_store %arg6[%c0_33, %c0_34, %c0_35], %99 {strides = array<i32>} : memref<1x8x32xf32, #tpu.memory_space<vmem>>, vector<1x8x32xf32>,
    return
  }
  func.func @transform_0(%arg0: i32, %arg1: i32) -> (i32, i32, i32) {
    %c0_i32 = arith.constant 0 : i32
    %c0_i32_0 = arith.constant 0 : i32
    %c0_i32_1 = arith.constant 0 : i32
    return %arg0, %c0_i32, %c0_i32_0 : i32, i32, i32
  }
  func.func @transform_1(%arg0: i32, %arg1: i32) -> (i32, i32) {
    %c0_i32 = arith.constant 0 : i32
    %c0_i32_0 = arith.constant 0 : i32
    %c0_i32_1 = arith.constant 0 : i32
    return %c0_i32, %c0_i32_0 : i32, i32
  }
  func.func @transform_2(%arg0: i32, %arg1: i32) -> (i32, i32) {
    %c0_i32 = arith.constant 0 : i32
    %c0_i32_0 = arith.constant 0 : i32
    %c0_i32_1 = arith.constant 0 : i32
    return %c0_i32, %c0_i32_0 : i32, i32
  }
  func.func @transform_3(%arg0: i32, %arg1: i32) -> (i32, i32, i32) {
    %c0_i32 = arith.constant 0 : i32
    %c0_i32_0 = arith.constant 0 : i32
    %c0_i32_1 = arith.constant 0 : i32
    return %arg0, %c0_i32, %c0_i32_0 : i32, i32, i32
  }
  func.func @transform_4(%arg0: i32, %arg1: i32) -> (i32, i32, i32) {
    %c0_i32 = arith.constant 0 : i32
    %c0_i32_0 = arith.constant 0 : i32
    return %arg0, %arg1, %c0_i32 : i32, i32, i32
  }
}

</mosaic_0001>

<bundles_post_ra>
// kernel: tpu_custom_call.1
= control target key start
LH: loop header
LB: loop body
LE: loop exit
PB: predicated region body
PF: predicated region fallthrough
CT: control target
= control target key end

     0   :  { %9 = vsyncpa [#allocation7], 0  ;;  %s1627_s0 = inlined_call_operand.hbm [shape: bf16[2,8,32], index: 0, kind: input, shape index: {}]   ;;  %s1628_s1 = inlined_call_operand.hbm [shape: bf16[32,96], index: 1, kind: input, shape index: {}]   ;;  %s1629_s2 = inlined_call_operand.vmem [shape: f32[1,96], index: 2, kind: input, shape index: {}]   ;;  %s1630_s3 = inlined_call_operand.vmem [shape: f32[2,1,8], index: 3, kind: input, shape index: {}]   ;;  %s1631_s4 = inlined_call_operand.hbm [shape: f32[2,8,32], index: 4, kind: output, shape index: {}]  }
   0x1   :  { %11 = vsyncpa [#allocation7 + $0x1], 0 }
   0x2   :  { %12 = vsyncpa [#allocation10], 0 }
   0x3   :  { %13 = vsyncpa [#allocation8], 0 }
   0x4   :  { %15 = vsyncpa [#allocation8 + $0x1], 0  ;;  %s1336_s15 = smov 0   ;;  %s1338_s16 = smov 0  }
   0x5   :  { %s1340_s17 = smov 0   ;;  %s1342_s18 = smov 0  }
   0x6   :  { %s1344_s19 = smov 0   ;;  %s1346_s20 = smov 0  }
   0x7 LB: > { %s936_s21 = sadd.s32 4294967295, %s1294_s20   ;;  %s937_s22 = sadd.s32 4294967294, %s1294_s20   ;;  %s1294_s20 = sphi %s1346_s20, %s21_s20   ;;  %s1290_s19 = sphi %s1344_s19, %s1655_s19   ;;  %s1286_s18 = sphi %s1342_s18, %s1654_s18   ;;  %s1282_s17 = sphi %s1340_s17, %s1653_s17   ;;  %s1278_s16 = sphi %s1338_s16, %s1652_s16   ;;  %s1274_s15 = sphi %s1336_s15, %s1651_s15  }
   0x8   : > { %p53_p0 = scmp.ne.s32.totalorder %s1278_s16, %s1274_s15  ;;  %p1370_p1 = scmp.eq.s32.totalorder %s936_s21, 0 }
   0x9   : > { %p1374_p2 = scmp.eq.s32.totalorder %s936_s21, 1  ;;  %p153_p3 = scmp.eq.s32.totalorder %s937_s22, 1 }
   0xa   : > { %s1636_s23 = scalar_select %p1370_p1, 1, 0 }
   0xb   : > { %s1637_s24 = scalar_select %p1374_p2, 1, 0 }
   0xc   : > { %p1380_p4 = por %p1370_p1, %p53_p0  ;;  %p938_p5 = scmp.ge.s32.totalorder %s1294_s20, 1 }
   0xd   : > { %p1385_p6 = por %p153_p3, %p53_p0  ;;  %p160_p7 = scmp.lt.s32.totalorder %s1294_s20, 3 }
   0xe   : > { %s1638_s25 = scalar_select %p1380_p4, 1, 0 }
   0xf   : > { %s1639_s26 = scalar_select %p1385_p6, 1, 0 }
  0x10   : > { %p1390_p8 = pnand %p938_p5, %p160_p7  ;;  %s1296_s28 = smov [#allocation9]  }
  0x11   : > { %s172_s29 = sshll.u32 %s1296_s28, 4  ;;  %s33_s5 = sadd.s32 1, %s1290_s19  ;;  %s173_s29 = int_to_ptr.vmem [resolvable:$true] %s172_s29 }
  0x12   : > { %s1640_s27 = scalar_select %p1390_p8, 1, 0 }
  0x13   : > { %p1052_p9 = pneg %p1390_p8  ;;  %s1150_s8 = scalar_lea.hbm %s1628_s1, 256 }
  0x14   : > { %p1151_p12 = scmp.ne.s32.totalorder %s1628_s1, %s1150_s8  ;;  %p1157_p5 = scmp.lt.u32.totalorder %s1150_s8, %s1628_s1 }
  0x15   : > { %p1399_p11 = pnand %p1052_p9, %p1370_p1 }
  0x17   : > { %p1152_p13 = pneg %p1399_p11 }
  0x19   : > { %p1153_p0 = pnand %p1152_p13, %p1151_p12 }
  0x1b   : > { %p1154_p3 = pneg %p1153_p0 }
  0x1d   : > { %p1159_p7 = pnand %p1157_p5, %p1154_p3 }
  0x1f   : > { %1162 = shalt.err (!%p1159_p7)
}
  0x20   : > { %s1163_s13 = scalar_lea.vmem %s173_s29, 256  ;;  %p1171_p1 = scmp.lt.s32.totalorder %s173_s29, %s173_s29 }
  0x21   : > { %p1164_p9 = scmp.ne.s32.totalorder %s173_s29, %s1163_s13  ;;  %p1172_p4 = scmp.lt.s32.totalorder %s1163_s13, %s1163_s13 }
  0x23   : > { %p1166_p10 = pnand %p1164_p9, %p1152_p13  ;;  %p1173_p8 = por %p1172_p4, %p1171_p1 }
  0x25   : > { %p1167_p6 = pneg %p1166_p10 }
  0x27   : > { %p1174_p2 = pnand %p1173_p8, %p1167_p6 }
  0x29   : > { %1177 = shalt.err (!%p1174_p2)
}
  0x2a   : > { %s1297_s14 = smov 64   ;;  %s1298_s21 = smov 4  }
  0x2b   : > { %1055 = dma.hbm_to_vmem [thread:$0]  (!%p1399_p11), %s1628_s1, 256, %s173_s29, [#allocation10], %s1297_s14, %s1297_s14, %s1298_s21  }
  0x2c   : > { %p35_p1 = scmp.ge.s32.totalorder %s33_s5, 2  ;;  %s40_s6 = sadd.s32 1, %s1282_s17 }
  0x2d   : > { %p47_p2 = scmp.ne.s32.totalorder %s1282_s17, %s1278_s16  ;;  %p48_p4 = scmp.eq.s32.totalorder %s1294_s20, 0 }
  0x2e   : > { %s1657_s5 = smov (%p35_p1, %s33_s5), 0  ;;  %p1643_p8 = scmp.ne.s32.totalorder %s1637_s24, 0 }
  0x2f   : > { %p1426_p6 = por %p48_p4, %p47_p2  ;;  %s37_s30 = ssub.s32 %s1290_s19, %s1657_s5 }
  0x30   : > { %p1432_p10 = por %p1643_p8, %p47_p2  ;;  %p1065_p12 = scmp.lt.s32.totalorder %s1294_s20, 2 }
  0x31   : > { %p38_p11 = scmp.eq.s32.totalorder %s37_s30, 0  ;;  %s189_s29 = sand.u32 1, %s1282_s17  }
  0x32   : > { %s941_s9 = sshll.u32 %s189_s29, 2  ;;  %s942_s11 = sshll.u32 %s1290_s19, 6 }
  0x33   : > { %s1441_s10 = scalar_select %p38_p11, %s1282_s17, %s40_s6  }
  0x34   : > { %s1447_s14 = scalar_lea.hbm %s1627_s0, %s942_s11  ;;  %s193_s24 = scalar_lea.vmem [#allocation6], %s941_s9 }
  0x35   : > { %s200_s21 = sshll.u32 %s193_s24, 4  ;;  %p1453_p13 = pnand %p1065_p12, %p1426_p6  ;;  %s1449_s21 = int_to_ptr.vmem [resolvable:$true] %s200_s21 }
  0x36   : > { %s190_s28 = scalar_lea.sflag [#allocation7], %s189_s29  ;;  %s1178_s6 = scalar_lea.hbm %s1447_s14, 64 }
  0x37   : > { %p1179_p0 = scmp.ne.s32.totalorder %s1447_s14, %s1178_s6  ;;  %p1180_p3 = pneg %p1453_p13 }
  0x38   : > { %s1183_s11 = scalar_lea.hbm %s1627_s0, 128  ;;  %p1184_p9 = scmp.lt.u32.totalorder %s1447_s14, %s1627_s0 }
  0x39   : > { %p1181_p5 = pnand %p1180_p3, %p1179_p0  ;;  %p1185_p1 = scmp.lt.u32.totalorder %s1183_s11, %s1178_s6 }
  0x3a   : > { %p1187_p4 = scmp.lt.u32.totalorder %s1178_s6, %s1447_s14 }
  0x3b   : > { %p1182_p7 = pneg %p1181_p5  ;;  %p1186_p2 = por %p1185_p1, %p1184_p9 }
  0x3d   : > { %p1188_p6 = por %p1187_p4, %p1186_p2 }
  0x3f   : > { %p1189_p8 = pnand %p1188_p6, %p1182_p7 }
  0x41   : > { %1192 = shalt.err (!%p1189_p8)
}
  0x42   : > { %s1193_s29 = scalar_lea.vmem %s1449_s21, 64  ;;  %s1299_s13 = smov [#allocation6]  }
  0x43   : > { %p1194_p12 = scmp.ne.s32.totalorder %s1449_s21, %s1193_s29  ;;  %s1198_s24 = sshll.u32 %s1299_s13, 4  ;;  %s1199_s24 = int_to_ptr.vmem [resolvable:$false] %s1198_s24 }
  0x44   : > { %s1200_s30 = scalar_lea.vmem %s1199_s24, 128  ;;  %p1201_p5 = scmp.lt.s32.totalorder %s1449_s21, %s1199_s24 }
  0x45   : > { %p1196_p11 = pnand %p1194_p12, %p1180_p3  ;;  %p1202_p9 = scmp.lt.s32.totalorder %s1200_s30, %s1193_s29 }
  0x47   : > { %p1197_p0 = pneg %p1196_p11  ;;  %p1203_p1 = por %p1202_p9, %p1201_p5 }
  0x49   : > { %p1204_p2 = pnand %p1203_p1, %p1197_p0 }
  0x4b   : > { %1207 = shalt.err (!%p1204_p2)
}
  0x4c   : > { %1059 = dma.hbm_to_vmem [thread:$0]  (!%p1453_p13), %s1447_s14, 64, %s1449_s21, %s190_s28  }
  0x4d   : > { %p1646_p7 = scmp.ne.s32.totalorder %s1640_s27, 0 }
  0x4e   : > { %s1485_s6 = sand.u32 (!%p1646_p7), 1, %s1278_s16   ;;  %p1647_p3 = scmp.ne.s32.totalorder (!%p1646_p7), %s1638_s25, 0 }
  0x4f   : > { %215 = sbr.rel (%p1646_p7) target bundleno = 1306 (0x51a), region = 36  ;;  %s944_s9 = sshll.u32 (!%p1646_p7), %s1485_s6, 2 }
  0x50   : > { %s218_s11 = scalar_lea.sflag (!%p1646_p7), [#allocation7], %s1485_s6  ;;  %s221_s7 = scalar_lea.vmem (!%p1646_p7), [#allocation6], %s944_s9 }
  0x56   : > { %1261 = dma.done.wait (%p1647_p3), %s218_s11, 64  }
  0x57   : > { %1263 = vsyncadd (%p1647_p3), %s218_s11, 4294967232  ;;  %p1648_p4 = scmp.ne.s32.totalorder %s1636_s23, 0 }
  0x59   : > { %1265 = dma.done.wait (%p1648_p4), [#allocation10], 256  }
  0x5a   : > { %1267 = vsyncadd (%p1648_p4), [#allocation10], 4294967040  ;;  %v1300_v0 = vmov 0.0   ;;  %vm1301_vm0 = vmmov 0   ;;  %v1129_v1 = vld [vmem:[#allocation9] sm:$0xff]   ;;  %v1130_v2 = vld [vmem:[#allocation9 + $0x8] sm:$0xff]  }
  0x5b   : > { %988 = vmatprep.subr.bf16.mxu0 %v1300_v0  ;;  %992 = vmatprep.mubr.msk.bf16.mxu0 %vm1301_vm0, %v1300_v0  ;;  %v261_v3 = vld [vmem:[%s221_s7] sm:$0xf]  ;;  %vm285_vm1 = vcmask 261120   ;;  %v947_v4 = vld [vmem:[%s1629_s2] ss:$0 sm:$0xff]  ;;  %vm336_vm2 = vcmask 257024  }
  0x5c   : > { %996 = vmatprep.subr.bf16.mxu1 %v1300_v0  ;;  %998 = vmatprep.mubr.msk.bf16.mxu1 %vm1301_vm0, %v1300_v0  ;;  %s1302_s27 = smov 96   ;;  %s1303_s14 = smov 120   ;;  %vm355_vm3 = vcmask 64512   ;;  %vm415_vm4 = vcmask 1043456   ;;  %vm813_vm5 = vcmask 130048   ;;  %vm815_vm6 = vcmask 195584  }
  0x5d   : > { %989 = vmatpush3.bf16.msra.mxu0 %v1129_v1  ;;  %s1304_s21 = smov 112   ;;  %s1305_s22 = smov 104  }
  0x5e   : > { %990 = vmatprep.subr.bf16.mxu0 %v1300_v0  ;;  %s1306_s28 = smov 64   ;;  %p253_p13 = scmp.lt.s32.totalorder %s1286_s18, 1 }
  0x5f   : > { %s1307_s30 = smov 8   ;;  %s1308_s9 = smov 16  }
  0x60   : > { %s254_s12 = scalar_select %p253_p13, %s1286_s18, 1 }
  0x61   : > { %991 = vmatpush3.bf16.msra.mxu0 %v1130_v2  ;;  %s1309_s11 = smov 24   ;;  %s946_s7 = sshll.u32 %s1485_s6, 3 }
  0x62   : > { %1002 = vmatprep.subr.bf16.mxu0 %v1300_v0  ;;  %s255_s24 = scalar_lea.vmem %s1630_s3, %s254_s12  ;;  %s965_s23 = sshll.u32 %s1286_s18, 7 }
  0x63   : > { %v952_v29 = vld [vmem:[%s255_s24] ss:$0 sm:$0xff]  ;;  %s252_s25 = scalar_lea.vmem [#allocation11], %s946_s7  ;;  %s1310_s18 = smov [#allocation11]  }
  0x64   : > { %993 = vmatmul.mubr.msk.bf16.vlgmr.msra.gmra.mrb[0].mxu0 %vm285_vm1, %v261_v3  ;;  %s1212_s29 = sshll.u32 %s1310_s18, 4  ;;  %s1213_s29 = int_to_ptr.vmem [resolvable:$false] %s1212_s29 }
  0x65   : > { %1004 = vmatprep.mubr.msk.bf16.mxu0 %vm1301_vm0, %v1300_v0  ;;  %s1214_s13 = scalar_lea.vmem %s1213_s29, 256 }
 0x137   : > { %v323_v5 = vpop.f32.mrb[0].mxu0 }
 0x138   : > { %v324_v6 = vadd.f32 %v947_v4, %v323_v5  ;;  %v994_v7 = vpop.f32.mrb[1].mxu0 }
 0x139   : > { %v326_v8 = vpop.f32.mrb[2].mxu0 }
 0x13a   : > { %v329_v9 = vpack.c.bf16 %v324_v6, %v324_v6  ;;  %v995_v10 = vpop.f32.mrb[3].mxu0 }
 0x13c   : > { %342 = vst.msk [vmem:[#allocation2] sm:$0xf] %vm336_vm2, %v329_v9  ;;  %333 = vrot.lane.b32.xlu0 %v329_v9, %s1302_s27  ;;  %s836_s27 = sshll.u32 %s252_s25, 4  ;;  %s1579_s27 = int_to_ptr.vmem [resolvable:$true] %s836_s27 }
 0x13d   : > { %s1208_s12 = scalar_lea.vmem %s1579_s27, 128  ;;  %p1215_p11 = scmp.lt.s32.totalorder %s1579_s27, %s1213_s29 }
 0x13e   : > { %p1209_p6 = scmp.ne.s32.totalorder %s1579_s27, %s1208_s12  ;;  %p1216_p0 = scmp.lt.s32.totalorder %s1214_s13, %s1208_s12 }
 0x140   : > { %p1210_p8 = pnand %p1209_p6, %p1432_p10  ;;  %p1217_p5 = por %p1216_p0, %p1215_p11 }
 0x142   : > { %p1211_p12 = pneg %p1210_p8 }
 0x143   : > { %v346_v11 = vld [vmem:[#allocation2] sm:$0xf] }
 0x144   : > { %v955_v12 = vcombine.low %v346_v11, %v346_v11  ;;  %p1218_p9 = pnand %p1217_p5, %p1211_p12 }
 0x146   : > { %464 = vrot.lane.b32.xlu1 %v955_v12, %s1303_s14 }
 0x1ae   : > { %v334_v13 = vpop.permute.xlu0 %333 }
 0x1af   : > { %337 = vst.msk [vmem:[#allocation3] sm:$0xf] %vm336_vm2, %v334_v13 }
 0x1b6   : > { %v347_v14 = vld [vmem:[#allocation3] sm:$0xf] }
 0x1b7   : > { %v360_v15 = vsel %vm355_vm3, %v347_v14, 0  ;;  %v956_v16 = vcombine.low %v347_v14, %v347_v14 }
 0x1b8   : > { %997 = vmatpush3.bf16.xpose.msra.mxu1 %v360_v15  ;;  %v465_v17 = vpop.permute.xlu1 %464 }
 0x1b9   : > { %469 = vrot.lane.b32.xlu0 %v956_v16, %s1303_s14  ;;  %582 = vrot.lane.b32.xlu1 %v956_v16, %s1304_s21 }
 0x1ba   : > { %1008 = vmatprep.subr.bf16.mxu1 %v1300_v0 }
 0x1bd   : > { %580 = vrot.lane.b32.xlu0 %v955_v12, %s1304_s21  ;;  %692 = vrot.lane.b32.xlu1 %v956_v16, %s1305_s22 }
 0x1bf   : > { %999 = vmatmul.mubr.msk.bf16.vlgmr.msra.gmra.mrb[0].mxu1 %vm355_vm3, %v346_v11 }
 0x1c0   : > { %1010 = vmatprep.mubr.msk.bf16.mxu1 %vm1301_vm0, %v1300_v0 }
 0x1c1   : > { %690 = vrot.lane.b32.xlu0 %v955_v12, %s1305_s22  ;;  %338 = vrot.lane.b32.xlu1 %v329_v9, %s1306_s28  ;;  %s822_s28 = scalar_lea.sflag [#allocation8], %s1485_s6 }
 0x22b   : > { %v470_v18 = vpop.permute.xlu0 %469  ;;  %v583_v19 = vpop.permute.xlu1 %582 }
 0x22c   : > { %v475_v20 = vsel %vm355_vm3, %v470_v18, 0  ;;  %v588_v23 = vsel %vm355_vm3, %v583_v19, 0 }
 0x22d   : > { %1009 = vmatpush3.bf16.xpose.msra.mxu1 %v475_v20 }
 0x22e   : > { %1020 = vmatprep.subr.bf16.mxu1 %v1300_v0 }
 0x22f   : > { %v693_v21 = vpop.permute.xlu1 %692  ;;  %v581_v24 = vpop.permute.xlu0 %580 }
 0x230   : > { %v698_v26 = vsel %vm355_vm3, %v693_v21, 0 }
 0x233   : > { %v339_v22 = vpop.permute.xlu1 %338  ;;  %v691_v28 = vpop.permute.xlu0 %690 }
 0x234   : > { %341 = vst.msk [vmem:[#allocation4] sm:$0xf] %vm336_vm2, %v339_v22  ;;  %1011 = vmatmul.mubr.msk.bf16.vlgmr.msra.gmra.mrb[4].mxu1 %vm355_vm3, %v465_v17 }
 0x235   : > { %1021 = vmatpush3.bf16.xpose.msra.mxu1 %v588_v23  ;;  %1022 = vmatprep.mubr.msk.bf16.mxu1 %vm1301_vm0, %v1300_v0 }
 0x236   : > { %1032 = vmatprep.subr.bf16.mxu1 %v1300_v0 }
 0x23b   : > { %v348_v25 = vld [vmem:[#allocation4] sm:$0xf] }
 0x23c   : > { %1023 = vmatmul.mubr.msk.bf16.vlgmr.msra.gmra.mrb[8].mxu1 %vm355_vm3, %v581_v24  ;;  %v417_v27 = vsel %vm415_vm4, %v348_v25, 0  ;;  %v958_v54 = vcombine.low %v348_v25, %v348_v25 }
 0x23d   : > { %1003 = vmatpush3.bf16.msra.mxu0 %v417_v27  ;;  %1033 = vmatpush3.bf16.xpose.msra.mxu1 %v698_v26 }
 0x23e   : > { %1034 = vmatprep.mubr.msk.bf16.mxu1 %vm1301_vm0, %v1300_v0  ;;  %1014 = vmatprep.subr.bf16.mxu0 %v1300_v0 }
 0x244   : > { %1035 = vmatmul.mubr.msk.bf16.vlgmr.msra.gmra.mrb[12].mxu1 %vm355_vm3, %v691_v28 }
 0x292   : > { %v396_v30 = vpop.f32.mrb[0].mxu1 }
 0x293   : > { %v397_v31 = vadd.f32 %v952_v29, %v396_v30  ;;  %v1000_v32 = vpop.f32.mrb[1].mxu1 }
 0x294   : > { %v399_v33 = vpop.f32.mrb[2].mxu1 }
 0x295   : > { %v1001_v34 = vpop.f32.mrb[3].mxu1  ;;  %v402_v35 = vsel %vm355_vm3, %v397_v31, -inf }
 0x296   : > { %403 = vmax.xlane.f32.xlu0 %v402_v35 }
 0x307   : > { %v511_v36 = vpop.f32.mrb[4].mxu1 }
 0x308   : > { %v512_v37 = vadd.f32 %v952_v29, %v511_v36  ;;  %v1012_v38 = vpop.f32.mrb[5].mxu1 }
 0x309   : > { %v514_v39 = vpop.f32.mrb[6].mxu1 }
 0x30a   : > { %v1013_v40 = vpop.f32.mrb[7].mxu1  ;;  %v517_v41 = vsel %vm355_vm3, %v512_v37, -inf }
 0x30b   : > { %518 = vmax.xlane.f32.xlu1 %v517_v41 }
 0x30f   : > { %v624_v42 = vpop.f32.mrb[8].mxu1 }
 0x310   : > { %v625_v43 = vadd.f32 %v952_v29, %v624_v42  ;;  %v1024_v44 = vpop.f32.mrb[9].mxu1 }
 0x311   : > { %v627_v45 = vpop.f32.mrb[10].mxu1 }
 0x312   : > { %v1025_v46 = vpop.f32.mrb[11].mxu1  ;;  %v630_v47 = vsel %vm355_vm3, %v625_v43, -inf }
 0x313   : > { %631 = vmax.xlane.f32.xlu0 %v630_v47 }
 0x317   : > { %v734_v48 = vpop.f32.mrb[12].mxu1 }
 0x318   : > { %v735_v49 = vadd.f32 %v952_v29, %v734_v48  ;;  %v1036_v50 = vpop.f32.mrb[13].mxu1 }
 0x319   : > { %v737_v51 = vpop.f32.mrb[14].mxu1 }
 0x31a   : > { %v1037_v52 = vpop.f32.mrb[15].mxu1  ;;  %v740_v53 = vsel %vm355_vm3, %v735_v49, -inf }
 0x31b   : > { %741 = vmax.xlane.f32.xlu0 %v740_v53 }
 0x31c   : > { %530 = vrot.lane.b32.xlu1 %v958_v54, %s1303_s14 }
 0x320   : > { %750 = vrot.lane.b32.xlu1 %v958_v54, %s1305_s22  ;;  %s1577_s22 = scalar_lea.hbm %s1631_s4, %s965_s23 }
 0x323   : > { %v404_v55 = vpop.xlane.xlu0 %403 }
 0x324   : > { %v405_v56 = vsub.f32 %v397_v31, %v404_v55 }
 0x326   : > { %v406_v57 = vmul.f32 1.442695, %v405_v56 }
 0x328   : > { %1134 = vpow2.f32 %v406_v57 }
 0x331   : > { %640 = vrot.lane.b32.xlu0 %v958_v54, %s1304_s21 }
 0x332   : > { %v1135_v58 = vpop.eup %1134 }
 0x333   : > { %v411_v59 = vpack.c.bf16 %v1135_v58, %v1135_v58  ;;  %v408_v12 = vsel %vm355_vm3, %v1135_v58, 0.0 }
 0x335   : > { %1005 = vmatmul.mubr.msk.bf16.vlgmr.msra.gmra.mrb[4].mxu0 %vm355_vm3, %v411_v59 }
 0x336   : > { %1016 = vmatprep.mubr.msk.bf16.mxu0 %vm1301_vm0, %v1300_v0 }
 0x398   : > { %v519_v60 = vpop.xlane.xlu1 %518 }
 0x399   : > { %v520_v61 = vsub.f32 %v512_v37, %v519_v60 }
 0x39b   : > { %v521_v62 = vmul.f32 1.442695, %v520_v61 }
 0x39c   : > { %v531_v63 = vpop.permute.xlu1 %530 }
 0x39d   : > { %1136 = vpow2.f32 %v521_v62  ;;  %v536_v1 = vsel %vm415_vm4, %v531_v63, 0 }
 0x39e   : > { %1015 = vmatpush3.bf16.msra.mxu0 %v536_v1 }
 0x39f   : > { %1026 = vmatprep.subr.bf16.mxu0 %v1300_v0 }
 0x3a0   : > { %v632_v2 = vpop.xlane.xlu0 %631  ;;  %v751_v15 = vpop.permute.xlu1 %750 }
 0x3a1   : > { %v633_v3 = vsub.f32 %v625_v43, %v632_v2  ;;  %v756_v18 = vsel %vm415_vm4, %v751_v15, 0 }
 0x3a3   : > { %v634_v4 = vmul.f32 1.442695, %v633_v3 }
 0x3a5   : > { %1138 = vpow2.f32 %v634_v4 }
 0x3a7   : > { %v1137_v5 = vpop.eup %1136 }
 0x3a8   : > { %v742_v6 = vpop.xlane.xlu0 %741  ;;  %v523_v7 = vsel %vm355_vm3, %v1137_v5, 0.0  ;;  %v526_v8 = vpack.c.bf16 %v1137_v5, %v1137_v5 }
 0x3a9   : > { %v743_v9 = vsub.f32 %v735_v49, %v742_v6  ;;  %524 = vadd.xlane.f32.xlu1 %v523_v7 }
 0x3aa   : > { %1017 = vmatmul.mubr.msk.bf16.vlgmr.msra.gmra.mrb[8].mxu0 %vm355_vm3, %v526_v8 }
 0x3ab   : > { %v744_v10 = vmul.f32 1.442695, %v743_v9  ;;  %1028 = vmatprep.mubr.msk.bf16.mxu0 %vm1301_vm0, %v1300_v0 }
 0x3ac   : > { %v641_v11 = vpop.permute.xlu0 %640 }
 0x3ad   : > { %1140 = vpow2.f32 %v744_v10  ;;  %v646_v13 = vsel %vm415_vm4, %v641_v11, 0  ;;  %409 = vadd.xlane.f32.xlu1 %v408_v12 }
 0x3ae   : > { %1027 = vmatpush3.bf16.msra.mxu0 %v646_v13 }
 0x3af   : > { %v1139_v14 = vpop.eup %1138  ;;  %1038 = vmatprep.subr.bf16.mxu0 %v1300_v0 }
 0x3b0   : > { %v636_v16 = vsel %vm355_vm3, %v1139_v14, 0.0  ;;  %v639_v17 = vpack.c.bf16 %v1139_v14, %v1139_v14 }
 0x3b1   : > { %637 = vadd.xlane.f32.xlu0 %v636_v16 }
 0x3b2   : > { %1029 = vmatmul.mubr.msk.bf16.vlgmr.msra.gmra.mrb[12].mxu0 %vm355_vm3, %v639_v17 }
 0x3b3   : > { %1039 = vmatpush3.bf16.msra.mxu0 %v756_v18  ;;  %1040 = vmatprep.mubr.msk.bf16.mxu0 %vm1301_vm0, %v1300_v0 }
 0x3b7   : > { %v1141_v19 = vpop.eup %1140 }
 0x3b8   : > { %v746_v20 = vsel %vm355_vm3, %v1141_v19, 0.0  ;;  %v749_v21 = vpack.c.bf16 %v1141_v19, %v1141_v19 }
 0x3b9   : > { %747 = vadd.xlane.f32.xlu0 %v746_v20 }
 0x3ba   : > { %1041 = vmatmul.mubr.msk.bf16.vlgmr.msra.gmra.mrb[16].mxu0 %vm355_vm3, %v749_v21 }
 0x408   : > { %v453_v22 = vpop.f32.mrb[4].mxu0 }
 0x409   : > { %v1006_v23 = vpop.f32.mrb[5].mxu0 }
 0x40a   : > { %v456_v24 = vpop.f32.mrb[6].mxu0 }
 0x40b   : > { %v1007_v25 = vpop.f32.mrb[7].mxu0 }
 0x436   : > { %v525_v26 = vpop.xlane.xlu1 %524 }
 0x437   : > { %1142 = vrcp.f32 %v525_v26 }
 0x43a   : > { %v410_v46 = vpop.xlane.xlu1 %409 }
 0x43e   : > { %v638_v27 = vpop.xlane.xlu0 %637 }
 0x43f   : > { %1144 = vrcp.f32 %v638_v27 }
 0x441   : > { %v1143_v28 = vpop.eup %1142 }
 0x446   : > { %v748_v32 = vpop.xlane.xlu0 %747 }
 0x447   : > { %1146 = vrcp.f32 %v748_v32 }
 0x448   : > { %1148 = vrcp.f32 %v410_v46 }
 0x449   : > { %v1145_v34 = vpop.eup %1144 }
 0x451   : > { %v1147_v40 = vpop.eup %1146 }
 0x452   : > { %v1149_v47 = vpop.eup %1148 }
 0x453   : > { %v460_v50 = vmul.f32 %v1149_v47, %v453_v22 }
 0x47d   : > { %v572_v29 = vpop.f32.mrb[8].mxu0 }
 0x47e   : > { %v579_v30 = vmul.f32 %v1143_v28, %v572_v29  ;;  %v1018_v31 = vpop.f32.mrb[9].mxu0 }
 0x47f   : > { %v575_v0 = vpop.f32.mrb[10].mxu0 }
 0x480   : > { %801 = vrot.lane.b32.xlu0 %v579_v30, %s1307_s30  ;;  %v1019_v33 = vpop.f32.mrb[11].mxu0 }
 0x485   : > { %v682_v35 = vpop.f32.mrb[12].mxu0 }
 0x486   : > { %v689_v36 = vmul.f32 %v1145_v34, %v682_v35  ;;  %v1030_v37 = vpop.f32.mrb[13].mxu0 }
 0x487   : > { %v685_v38 = vpop.f32.mrb[14].mxu0 }
 0x488   : > { %805 = vrot.lane.b32.xlu1 %v689_v36, %s1308_s9  ;;  %v1031_v39 = vpop.f32.mrb[15].mxu0 }
 0x48d   : > { %v792_v41 = vpop.f32.mrb[16].mxu0 }
 0x48e   : > { %v799_v42 = vmul.f32 %v1147_v40, %v792_v41  ;;  %v1042_v43 = vpop.f32.mrb[17].mxu0 }
 0x48f   : > { %v795_v44 = vpop.f32.mrb[18].mxu0 }
 0x490   : > { %809 = vrot.lane.b32.xlu1 %v799_v42, %s1309_s11  ;;  %v1043_v45 = vpop.f32.mrb[19].mxu0 }
 0x4f2   : > { %v802_v48 = vpop.permute.xlu0 %801 }
 0x4f3   : > { %v812_v51 = vsel %vm355_vm3, %v460_v50, %v802_v48 }
 0x4fa   : > { %v806_v49 = vpop.permute.xlu1 %805 }
 0x4fb   : > { %v814_v52 = vsel %vm813_vm5, %v812_v51, %v806_v49 }
 0x502   : > { %v810_v53 = vpop.permute.xlu1 %809 }
 0x503   : > { %v816_v54 = vsel %vm815_vm6, %v814_v52, %v810_v53 }
 0x504   : > { %818 = vst.msk [vmem:[#allocation5] sm:$0xff] %vm285_vm1, %v816_v54 }
 0x50b   : > { %v819_v55 = vld [vmem:[#allocation5] sm:$0xff] }
 0x50c   : > { %820 = vst.msk [vmem:[%s252_s25] sm:$0xff] %vm285_vm1, %v819_v55 }
 0x50d   : > { %1221 = shalt.err (!%p1218_p9)
}
 0x50e   : > { %s1222_s6 = scalar_lea.hbm %s1577_s22, 128  ;;  %s1226_s9 = scalar_lea.hbm %s1631_s4, 256 }
 0x50f   : > { %p1223_p1 = scmp.ne.s32.totalorder %s1577_s22, %s1222_s6  ;;  %p1227_p3 = scmp.lt.u32.totalorder %s1577_s22, %s1631_s4 }
 0x510   : > { %p1228_p4 = scmp.lt.u32.totalorder %s1226_s9, %s1222_s6  ;;  %p1230_p6 = scmp.lt.u32.totalorder %s1222_s6, %s1577_s22 }
 0x511   : > { %p1224_p2 = pnand %p1223_p1, %p1432_p10 }
 0x512   : > { %p1229_p13 = por %p1228_p4, %p1227_p3 }
 0x513   : > { %p1225_p7 = pneg %p1224_p2 }
 0x514   : > { %p1231_p8 = por %p1230_p6, %p1229_p13 }
 0x516   : > { %p1232_p12 = pnand %p1231_p8, %p1225_p7 }
 0x518   : > { %1235 = shalt.err (!%p1232_p12)
}
 0x519   : > { %1050 = dma.vmem_to_hbm [thread:$0]  (%p1432_p10), %s1579_s27, 128, %s1577_s22, %s822_s28  }
 0x51a PF: > { %s848_s23 = sand.u32 1, %s1274_s15   ;;  %p1649_p11 = scmp.ne.s32.totalorder %s1639_s26, 0 }
 0x51b   : > { %p1650_p0 = scmp.ge.s32.totalorder %s1294_s20, 2  ;;  %s849_s25 = scalar_lea.sflag [#allocation8], %s848_s23 }
 0x51d   : > { %p1061_p5 = pnand %p1650_p0, %p1649_p11 }
 0x51f   : > { %1269 = dma.done.wait (!%p1061_p5), %s849_s25, 128  }
 0x520   : > { %1271 = vsyncadd (!%p1061_p5), %s849_s25, 4294967168  ;;  %s21_s20 = sadd.s32 1, %s1294_s20   ;;  %s1651_s15 = smov %s1278_s16 }
 0x521   : > { %p18_p9 = scmp.ge.s32.totalorder %s21_s20, 4   ;;  %s1652_s16 = smov %s1282_s17 }
 0x522   : > { %s1653_s17 = smov %s1441_s10  ;;  %s1654_s18 = smov %s1290_s19 }
 0x523   : > { %s1655_s19 = smov %s1657_s5  ;;  %20 = sbr.rel (!%p18_p9) target bundleno = 7 (0x7), region = 93 }
 0x52a   :  { %854 = vsyncpa [#allocation7], 1 }
 0x52b   :  { %856 = vsyncpa [#allocation7 + $0x1], 1 }
 0x52c   :  { %857 = vsyncpa [#allocation10], 1 }
 0x52d   :  { %858 = vsyncpa [#allocation8], 1 }
 0x52e   :  { %860 = vsyncpa [#allocation8 + $0x1], 1 }

</bundles_post_ra>
